<compile_context>
chip_gen: v6e
topology: v6e:2x2x1
jax: 0.10.0
libtpu: 0.0.40
codegen_flags: <defaults>
</compile_context>

<pallas_src>
import math

import numpy as np

import jax
import jax.numpy as jnp
from jax import lax
from jax.experimental import pallas as pl
from jax.experimental.pallas import tpu as pltpu


def _pair(v):
    return (v, v) if isinstance(v, int) else tuple(v)


def _round_up(n, m):
    return ((n + m - 1) // m) * m


def _device_kind():
    try:
        return jax.devices()[0].device_kind.lower()
    except Exception:
        return ""


def _vmem_budget_bytes():
    kind = _device_kind()
    if "v7" in kind:
        return 48 << 20      # 64 MiB physical per v7x TensorCore -> leave headroom
    return 100 << 20         # 128 MiB physical on v5e / v6e


def _lane_align(n):
    # 256-wide N alignment only helps once compute-bound (and only on the
    # 2x256x256-MXU generations); for tiny N keep 128 to avoid doubling
    # output writeback.
    kind = _device_kind()
    if n > 128 and ("v6" in kind or "v7" in kind):
        return 256
    return 128


# ----------------------------------------------------------------------------
# Pallas kernel:  out = scale * (x @ W^T) + bias        (single K-collapsed dot)
# ----------------------------------------------------------------------------
def _procrustes_gemm_kernel(scale_ref, x_ref, wt_ref, b_ref, o_ref):
    # scale_ref: SMEM (1,) f32; x_ref: (tm, K) bf16; wt_ref: (K, Np) bf16
    # (VMEM-resident across the whole grid); b_ref: (1, Np) f32; o_ref: (tm, Np).
    # (scale * x) @ W^T + b == scale * (x @ W^T) + b : apply scale to the
    # (tm, Np) product instead of the (tm, K) input (saves tm*K VPU mults).
    acc = jnp.dot(x_ref[...], wt_ref[...], preferred_element_type=jnp.float32)
    o_ref[...] = (acc * scale_ref[0] + b_ref[...]).astype(o_ref.dtype)


def _plan_tiles(M, K, Np, out_bytes, tm_req, x_buffers):
    """Pick the M tile and scoped-VMEM limit for the collapsed-K GEMM."""
    budget = _vmem_budget_bytes()
    Kl = _round_up(K, 128)     # VMEM lane padding of the (tm, K) block
    granule = 16               # bf16 sublane packing

    def plan_bytes(tm):
        return (x_buffers * tm * Kl * 2     # x tiles (bf16, pipelined)
                + 2 * Kl * Np * 2           # resident W^T (bf16; 2x safety)
                + 2 * 8 * Np * 4            # bias
                + 2 * tm * Np * out_bytes)  # output tiles

    def limit(tm):
        return int(1.3 * plan_bytes(tm)) + (8 << 20)

    tm = max(granule, _round_up(tm_req, granule))
    while tm > granule and limit(tm) > budget:
        tm = max(granule, _round_up(tm // 2, granule))
    if limit(tm) > budget:
        raise ValueError(
            f"C*kh*kw = {K} too large for a VMEM-resident W^T plan "
            f"(needs ~{plan_bytes(tm) >> 20} MiB). "
            "TODO(synk): add a K-tiled fallback for extreme kernel sizes.")

    # Guarantee >= 2 M blocks whenever possible so the 'parallel' axis actually
    # shards across v7x's two TensorCores (no-op cost on v5e/v6e).
    if M <= tm:
        tm = _round_up(-(-M // 2), granule) if M >= 2 * granule else M

    vmem_limit = min(budget, max(32 << 20, limit(tm)))
    return tm, vmem_limit


def procrustes_gemm(x_col, wt_pad, bias_pad, scale, *, tm=None,
                    out_dtype=jnp.float32, x_buffers=2):
    """(scale * x_col) @ W^T + bias on the MXU.

    x_col:    (M, K) bf16  -- im2col rows (batch*spatial), K = C*kh*kw unpadded.
    wt_pad:   (K, Np) bf16 -- W^T, channel dim padded to a lane multiple.
    bias_pad: (1, Np) f32.
    scale:    scalar f32.
    Returns (M, Np) out_dtype (caller drops the Np-N channel padding, if any).
    """
    M, K = x_col.shape
    Kw, Np = wt_pad.shape
    assert Kw == K, (Kw, K)

    out_bytes = np.dtype(out_dtype).itemsize
    if tm is None:
        tm = 1024 if _vmem_budget_bytes() >= (96 << 20) else 512
    tm_eff, vmem_limit = _plan_tiles(M, K, Np, out_bytes, tm, x_buffers)

    # Deeper x pipelining (e.g. 3 buffers) is optional on big-VMEM generations;
    # default 2 keeps the compiler's standard double-buffering.
    x_kwargs = {} if x_buffers == 2 else {"pipeline_mode": pl.Buffered(x_buffers)}

    s_arr = jnp.asarray(scale, jnp.float32).reshape((1,))

    return pl.pallas_call(
        _procrustes_gemm_kernel,
        out_shape=jax.ShapeDtypeStruct((M, Np), out_dtype),
        grid_spec=pltpu.PrefetchScalarGridSpec(
            num_scalar_prefetch=0,
            grid=(pl.cdiv(M, tm_eff),),
            in_specs=[
                pl.BlockSpec(memory_space=pltpu.SMEM),                    # scale
                pl.BlockSpec((tm_eff, K), lambda i: (i, 0), **x_kwargs),  # x rows
                pl.BlockSpec((K, Np), lambda i: (0, 0)),                  # W^T (resident)
                pl.BlockSpec((1, Np), lambda i: (0, 0)),                  # bias (resident)
            ],
            out_specs=pl.BlockSpec((tm_eff, Np), lambda i: (i, 0)),
        ),
        compiler_params=pltpu.CompilerParams(
            dimension_semantics=("parallel",),
            vmem_limit_bytes=vmem_limit,
        ),
    )(s_arr, x_col, wt_pad, bias_pad)


# ----------------------------------------------------------------------------
# im2col: single fused XLA op, output already in (rows, K) layout.
# ----------------------------------------------------------------------------
def extract_patches(x, kernel_size, stride, padding, dilation):
    """Returns (x_col, out_h, out_w); x_col has shape (B*out_h*out_w, C*kh*kw).

    The K axis is ordered (C, kh, kw) -- identical to torch.nn.Unfold -- so a
    ProcrustesLinear weight of shape (N, C*kh*kw) applies unchanged.  Patches
    inherit x's dtype, so casting x to bf16 *before* this call materializes the
    expanded tensor directly in bf16 (no separate cast/pad pass).
    """
    kh, kw = kernel_size
    patches = lax.conv_general_dilated_patches(
        x, filter_shape=(kh, kw), window_strides=stride,
        padding=[(padding[0], padding[0]), (padding[1], padding[1])],
        rhs_dilation=dilation,
        dimension_numbers=("NCHW", "OIHW", "NHWC"),
    )  # (B, out_h, out_w, C*kh*kw) -- K on the last (lane) axis, no transpose.
    B, oh, ow, K = patches.shape
    return patches.reshape(B * oh * ow, K), oh, ow
    # TODO(synk): fully fused variant -- stream raw x tiles and accumulate the
    # kh*kw shifted (tm, C)x(C, Np) dots inside the kernel, eliminating the
    # kh*kw-expanded HBM tensor entirely (needs overlapping/strided input
    # windows via pl.Element or manual DMA; next lever after this revision).


def _verify_patch_order(C, kh, kw, dilation):
    """One-time library-path guard: feature axis must be ordered (C, kh, kw)."""
    dh, dw = dilation
    hh, ww = (kh - 1) * dh + 1, (kw - 1) * dw + 1
    t = jnp.arange(C * hh * ww, dtype=jnp.float32).reshape(1, C, hh, ww)
    p = lax.conv_general_dilated_patches(
        t, filter_shape=(kh, kw), window_strides=(1, 1),
        padding=[(0, 0), (0, 0)], rhs_dilation=(dh, dw),
        dimension_numbers=("NCHW", "OIHW", "NHWC"))
    got = np.asarray(p).reshape(-1)
    want = np.asarray(t[0, :, ::dh, ::dw]).reshape(-1)
    assert np.array_equal(got, want), \
        "conv_general_dilated_patches feature order != (C, kh, kw)"


class ProcrustesConv2dPallas:
    """JAX/Pallas port of ProcrustesConv2d (forward only)."""

    def __init__(self, in_channels, out_channels, kernel_size, stride=1,
                 padding=0, dilation=1, allow_scale=True, allow_translation=True,
                 channels_last_output=False, out_dtype=jnp.float32,
                 tm=None, x_buffers=2, key=jax.random.PRNGKey(0)):
        self.in_channels = in_channels
        self.out_channels = out_channels
        self.kernel_size = _pair(kernel_size)
        self.stride = _pair(stride)
        self.padding = _pair(padding)
        self.dilation = _pair(dilation)
        self.allow_scale = allow_scale
        self.allow_translation = allow_translation
        self.channels_last_output = channels_last_output
        self.out_dtype = out_dtype
        self.tm = tm
        self.x_buffers = x_buffers

        kh, kw = self.kernel_size
        K = in_channels * kh * kw
        N = out_channels

        _verify_patch_order(in_channels, kh, kw, self.dilation)

        k_w, k_b = jax.random.split(key)
        # Deterministic (semi-)orthogonal weight (N, K): rows orthonormal
        # (mimics torch.nn.utils.parametrizations.orthogonal on the Linear).
        a = jax.random.normal(k_w, (K, N), dtype=jnp.float32)
        q, _ = jnp.linalg.qr(a)                      # (K, N) orthonormal columns
        self.weight = q.T                            # (N, K)
        bound = 1.0 / math.sqrt(K)
        self.bias = (
            jax.random.uniform(k_b, (N,), jnp.float32, -bound, bound)
            if allow_translation else jnp.zeros((N,), jnp.float32)
        )
        # `allow_scale` only controls trainability in PyTorch; at init scale is
        # 1.0 either way, so the forward math is identical (forward-only port).
        self.scale = jnp.float32(1.0)

        # Lane-padded bf16 W^T and f32 bias, built once (tiny arrays). bf16
        # weights are only approximately orthogonal; GEMM accumulation is f32.
        Np = _round_up(N, _lane_align(N))
        self._wt_pad = jnp.pad(self.weight.T.astype(jnp.bfloat16),
                               ((0, 0), (0, Np - N)))        # (K, Np)
        self._bias_pad = jnp.pad(self.bias, (0, Np - N)).reshape(1, Np)
        # TODO(synk): init_by_regression (SVD-based Procrustes fit) is an
        # offline initializer, not part of the forward pass -- not ported.

    def __call__(self, x):
        # x: (B, C_in, H, W) float (NCHW, like PyTorch).
        B = x.shape[0]
        # Cast to bf16 BEFORE im2col so the expanded tensor is bf16 end-to-end.
        x_col, oh, ow = extract_patches(
            x.astype(jnp.bfloat16), self.kernel_size, self.stride,
            self.padding, self.dilation)
        y = procrustes_gemm(x_col, self._wt_pad, self._bias_pad, self.scale,
                            tm=self.tm, out_dtype=self.out_dtype,
                            x_buffers=self.x_buffers)
        # Fused epilogue: reshape + channel-unpad slice, then (optionally) one
        # NCHW transpose at the API boundary only.
        y = y.reshape(B, oh, ow, -1)[..., : self.out_channels]
        if self.channels_last_output:
            return y
        return jnp.transpose(y, (0, 3, 1, 2))


if __name__ == "__main__":
    key = jax.random.PRNGKey(0)
    k_x, k_params = jax.random.split(key)

    B, C_in, H, W = 2, 4, 16, 16
    C_out, ksize, stride, padding, dilation = 8, 3, 1, 1, 1

    x = jax.random.normal(k_x, (B, C_in, H, W), dtype=jnp.float32)

    module = ProcrustesConv2dPallas(
        in_channels=C_in, out_channels=C_out, kernel_size=ksize,
        stride=stride, padding=padding, dilation=dilation,
        allow_scale=True, allow_translation=True, key=k_params)

    y = jax.block_until_ready(module(x))
    assert y.shape == (B, C_out, H, W), y.shape

    # Reference 1: f32 GEMM on the same im2col rows (bf16-loosened tolerance).
    x_col, oh, ow = extract_patches(x, module.kernel_size, module.stride,
                                    module.padding, module.dilation)
    ref = (module.scale * x_col) @ module.weight.T + module.bias
    ref = jnp.transpose(ref.reshape(B, oh, ow, C_out), (0, 3, 1, 2))
    assert jnp.allclose(y, ref, atol=1e-1, rtol=5e-2), \
        float(jnp.max(jnp.abs(y - ref)))

    # Reference 2: the module is mathematically a Conv2d with the orthogonal
    # weight reshaped to OIHW -- cross-checks patch ordering + GEMM + epilogue.
    w4 = module.weight.reshape(C_out, C_in, ksize, ksize)
    ref_conv = lax.conv_general_dilated(
        module.scale * x, w4, window_strides=(stride, stride),
        padding=[(padding, padding), (padding, padding)],
        rhs_dilation=(dilation, dilation),
        dimension_numbers=("NCHW", "OIHW", "NCHW"),
    ) + module.bias[None, :, None, None]
    assert jnp.allclose(y, ref_conv, atol=1e-1, rtol=5e-2), \
        float(jnp.max(jnp.abs(y - ref_conv)))

    # Second config: stride 2 (small-M, >=2-block path) with bf16 NHWC output.
    module2 = ProcrustesConv2dPallas(
        in_channels=C_in, out_channels=C_out, kernel_size=ksize,
        stride=2, padding=1, dilation=1, channels_last_output=True,
        out_dtype=jnp.bfloat16, key=k_params)
    y2 = jax.block_until_ready(module2(x))
    assert y2.shape == (B, 8, 8, C_out), y2.shape

    print("KERNEL_OK")
</pallas_src>

<mosaic_0001>
module attributes {stable_mosaic.version = 11 : i64} {
  func.func @_procrustes_gemm_kernel(%arg0: i32, %arg1: memref<1xf32, #tpu.memory_space<smem>>, %arg2: memref<256x36xbf16, #tpu.memory_space<vmem>>, %arg3: memref<36x128xbf16, #tpu.memory_space<vmem>>, %arg4: memref<1x128xf32, #tpu.memory_space<vmem>>, %arg5: memref<256x128xf32, #tpu.memory_space<vmem>>) attributes {dimension_semantics = [#tpu.dimension_semantics<parallel>], iteration_bounds = array<i64: 2>, scalar_prefetch = 0 : i64, scratch_operands = 0 : i64, tpu.core_type = #tpu.core_type<tc>, window_params = [{transform_indices = @transform_0, window_bounds = array<i64: 1>}, {transform_indices = @transform_1, window_bounds = array<i64: 256, 36>}, {pipeline_mode = #tpu.pipeline_mode<synchronous>, transform_indices = @transform_2, window_bounds = array<i64: 36, 128>}, {pipeline_mode = #tpu.pipeline_mode<synchronous>, transform_indices = @transform_3, window_bounds = array<i64: 1, 128>}, {transform_indices = @transform_4, window_bounds = array<i64: 256, 128>}]} {
    %c0 = arith.constant 0 : index
    %c0_0 = arith.constant 0 : index
    %0 = vector.load %arg2[%c0, %c0_0] : memref<256x36xbf16, #tpu.memory_space<vmem>>, vector<256x36xbf16>
    %c0_1 = arith.constant 0 : index
    %c0_2 = arith.constant 0 : index
    %1 = vector.load %arg3[%c0_1, %c0_2] : memref<36x128xbf16, #tpu.memory_space<vmem>>, vector<36x128xbf16>
    %cst = arith.constant dense<0.000000e+00> : vector<256x128xf32>
    %2 = tpu.matmul %0, %1, %cst {dimension_numbers = #tpu.dot_dimension_numbers<[1], [0], [0], [1], [0, 0, 1, 1], [], []>} : vector<256x36xbf16>, vector<36x128xbf16>, vector<256x128xf32> -> vector<256x128xf32>
    %c0_3 = arith.constant 0 : index
    %3 = memref.load %arg1[%c0_3] : memref<1xf32, #tpu.memory_space<smem>>
    %4 = vector.broadcast %3 : f32 to vector<256x128xf32>
    %5 = arith.mulf %2, %4 : vector<256x128xf32>
    %c0_4 = arith.constant 0 : index
    %c0_5 = arith.constant 0 : index
    %6 = vector.load %arg4[%c0_4, %c0_5] : memref<1x128xf32, #tpu.memory_space<vmem>>, vector<1x128xf32>
    %7 = vector.broadcast %6 : vector<1x128xf32> to vector<256x128xf32>
    %8 = arith.addf %5, %7 : vector<256x128xf32>
    %c0_6 = arith.constant 0 : index
    %c0_7 = arith.constant 0 : index
    %9 = vector.load %arg5[%c0_6, %c0_7] : memref<256x128xf32, #tpu.memory_space<vmem>>, vector<256x128xf32>
    tpu.vector_store %arg5[%c0_6, %c0_7], %8 {strides = array<i32>} : memref<256x128xf32, #tpu.memory_space<vmem>>, vector<256x128xf32>,
    return
  }
  func.func @transform_0(%arg0: i32) -> i32 {
    %c0_i32 = arith.constant 0 : i32
    %c0_i32_0 = arith.constant 0 : i32
    return %c0_i32 : i32
  }
  func.func @transform_1(%arg0: i32) -> (i32, i32) {
    %c0_i32 = arith.constant 0 : i32
    %c0_i32_0 = arith.constant 0 : i32
    return %arg0, %c0_i32 : i32, i32
  }
  func.func @transform_2(%arg0: i32) -> (i32, i32) {
    %c0_i32 = arith.constant 0 : i32
    %c0_i32_0 = arith.constant 0 : i32
    %c0_i32_1 = arith.constant 0 : i32
    return %c0_i32, %c0_i32_0 : i32, i32
  }
  func.func @transform_3(%arg0: i32) -> (i32, i32) {
    %c0_i32 = arith.constant 0 : i32
    %c0_i32_0 = arith.constant 0 : i32
    %c0_i32_1 = arith.constant 0 : i32
    return %c0_i32, %c0_i32_0 : i32, i32
  }
  func.func @transform_4(%arg0: i32) -> (i32, i32) {
    %c0_i32 = arith.constant 0 : i32
    %c0_i32_0 = arith.constant 0 : i32
    return %arg0, %c0_i32 : i32, i32
  }
}

</mosaic_0001>

<bundles_post_ra>
// kernel: tpu_custom_call.1
= control target key start
LH: loop header
LB: loop body
LE: loop exit
PB: predicated region body
PF: predicated region fallthrough
CT: control target
= control target key end

     0   :  { %s1249_s0 = inlined_call_operand.<no memory space> [shape: f32[1], index: 0, kind: input, shape index: {}]   ;;  %s1250_s1 = inlined_call_operand.vmem [shape: bf16[512,36], index: 1, kind: input, shape index: {}]   ;;  %s1251_s2 = inlined_call_operand.vmem [shape: bf16[36,128], index: 2, kind: input, shape index: {}]   ;;  %s1252_s3 = inlined_call_operand.vmem [shape: f32[1,128], index: 3, kind: input, shape index: {}]   ;;  %s1253_s4 = inlined_call_operand.hbm [shape: f32[512,128], index: 4, kind: output, shape index: {}]  }
   0x1   :  { %9 = sst [smem:[#allocation2]] %s1249_s0 }
   0x2   :  { %10 = vsyncpa [#allocation4], 0 }
   0x3   :  { %12 = vsyncpa [#allocation4 + $0x1], 0  ;;  %s995_s17 = smov 0   ;;  %s997_s18 = smov 0  }
   0x4   :  { %s999_s19 = smov 0   ;;  %s1001_s20 = smov 0  }
   0x5 LB: > { %s1016_s0 = sadd.s32 4294967295, %s962_s20   ;;  %s728_s21 = sadd.s32 4294967294, %s962_s20   ;;  %s962_s20 = sphi %s1001_s20, %s1259_s20   ;;  %s958_s19 = sphi %s999_s19, %s1258_s19   ;;  %s954_s18 = sphi %s997_s18, %s1257_s18   ;;  %s950_s17 = sphi %s995_s17, %s1256_s17  }
   0x6   : > { %s1020_s22 = sadd.s32 1, %s962_s20   ;;  %s114_s23 = sadd.s32 1, %s958_s19 }
   0x7   : > { %s111_s24 = ssub.s32 %s962_s20, %s1020_s22  ;;  %p124_p0 = scmp.ne.s32.totalorder %s958_s19, %s954_s18 }
   0x8   : > { %p112_p1 = scmp.eq.s32.totalorder %s111_s24, 0  ;;  %p125_p2 = scmp.eq.s32.totalorder %s1016_s0, 1 }
   0x9   : > { %p130_p3 = scmp.ne.s32.totalorder %s954_s18, %s950_s17  ;;  %p131_p4 = scmp.eq.s32.totalorder %s728_s21, 1 }
   0xa   : > { %s1031_s25 = scalar_select %p112_p1, %s958_s19, %s114_s23  }
   0xb   : > { %p1033_p5 = por %p125_p2, %p124_p0  ;;  %p1037_p6 = por %p131_p4, %p130_p3 }
   0xc   : > { %p731_p7 = scmp.ge.s32.totalorder %s962_s20, 1  ;;  %p167_p8 = scmp.lt.s32.totalorder %s962_s20, 3 }
   0xe   : > { %p168_p9 = pnand %p731_p7, %p167_p8 }
   0xf   : > { %s733_s6 = sshll.u32 (!%p168_p9), %s1016_s0, 5  ;;  %s547_s13 = sld [smem:[#allocation2]] (!%p168_p9) }
  0x10   : > { %171 = sbr.rel (%p168_p9) target bundleno = 275 (0x113), region = 36  ;;  %p194_p10 = scmp.lt.s32.totalorder (!%p168_p9), %s733_s6, 63 }
  0x11   : > { %s190_s14 = sand.u32 (!%p168_p9), 1, %s954_s18   ;;  %s776_s24 = sshll.u32 (!%p168_p9), %s1016_s0, 12 }
  0x12   : > { %s732_s15 = sshll.u32 (!%p168_p9), %s190_s14, 8  ;;  %s1197_s0 = scalar_lea.hbm (!%p168_p9), %s1253_s4, %s776_s24 }
  0x13   : > { %s1106_s23 = scalar_lea.vmem (!%p168_p9), [#allocation3], %s732_s15  ;;  %s1209_s5 = scalar_lea.sflag (!%p168_p9), [#allocation4], %s190_s14 }
  0x14   : > { %s666_s28 = sshll.u32 (!%p168_p9), %s1106_s23, 4  ;;  %s964_s7 = smov (!%p168_p9), [#allocation3]   ;;  %s1199_s28 = int_to_ptr.vmem [resolvable:$true] %s666_s28 }
  0x15   : > { %v883_v0 = vld [vmem:[%s1251_s2 + $0x10] ss:$0 sps:$4 sm:$0x33]   ;;  %vm382_vm0 = vcmask 1041408   ;;  %v884_v1 = vld [vmem:[%s1251_s2 + $0x8] sm:$0xff]   ;;  %v885_v3 = vld [vmem:[%s1251_s2] sm:$0xff]   ;;  %v1091_v20 = vstv %s547_s13 }
  0x16   : > { %840 = vmatprep.subr.msk.bf16.mxu0 %vm382_vm0, %v883_v0  ;;  %841 = vmatprep.subr.msk.bf16.mxu1 %vm382_vm0, %v883_v0  ;;  %v384_v2 = vsel %vm382_vm0, %v883_v0, 0  ;;  %s1261_s6 = smov (!%p194_p10, %s733_s6), 63  ;;  %vm333_vm1 = vcmask 293888   ;;  %v1098_v22 = vld [vmem:[%s1252_s3] ss:$0 sm:$0xff]  ;;  %s906_s8 = sshll.u32 %s964_s7, 4  ;;  %s907_s8 = int_to_ptr.vmem [resolvable:$false] %s906_s8 }
  0x17   : > { %797 = vmatpush3.bf16.msra.mxu0 %v384_v2  ;;  %837 = vmatpush3.bf16.msra.mxu1 %v384_v2  ;;  %s734_s9 = sshll.u32 %s1261_s6, 2  ;;  %s902_s6 = scalar_lea.vmem %s1199_s28, 4096 }
  0x18   : > { %798 = vmatprep.subr.bf16.mxu0 %v884_v1  ;;  %835 = vmatprep.subr.bf16.mxu1 %v884_v1  ;;  %s1056_s12 = scalar_lea.vmem %s1250_s1, %s734_s9  ;;  %p903_p11 = scmp.ne.s32.totalorder %s1199_s28, %s902_s6 }
  0x19   : > { %v886_v4 = vld [vmem:[%s1056_s12] sm:$0xff]   ;;  %v888_v6 = vld [vmem:[%s1056_s12 + $0x8] sm:$0xff]   ;;  %v890_v8 = vld [vmem:[%s1056_s12 + $0x10] sm:$0xff]   ;;  %s908_s9 = scalar_lea.vmem %s907_s8, 8192  ;;  %p909_p0 = scmp.lt.s32.totalorder %s1199_s28, %s907_s8 }
  0x1a   : > { %v887_v5 = vld [vmem:[%s1056_s12 + $0x40] sm:$0xff]   ;;  %802 = vmatprep.mubr.msk.bf16.mxu0 %vm333_vm1, %v886_v4  ;;  %v889_v7 = vld [vmem:[%s1056_s12 + $0x48] sm:$0xff]   ;;  %v891_v9 = vld [vmem:[%s1056_s12 + $0x50] sm:$0xff]   ;;  %p904_p12 = pnand %p903_p11, %p1033_p5  ;;  %p910_p1 = scmp.lt.s32.totalorder %s908_s9, %s902_s6 }
  0x1b   : > { %799 = vmatpush3.bf16.msra.mxu0 %v884_v1  ;;  %838 = vmatpush3.bf16.msra.mxu1 %v884_v1  ;;  %v892_v10 = vld [vmem:[%s1056_s12 + $0x18] sm:$0xff]   ;;  %v894_v12 = vld [vmem:[%s1056_s12 + $0x20] sm:$0xff]   ;;  %v896_v14 = vld [vmem:[%s1056_s12 + $0x28] sm:$0xff]  }
  0x1c   : > { %800 = vmatprep.subr.bf16.mxu0 %v885_v3  ;;  %836 = vmatprep.subr.bf16.mxu1 %v885_v3  ;;  %v893_v11 = vld [vmem:[%s1056_s12 + $0x58] sm:$0xff]   ;;  %v895_v13 = vld [vmem:[%s1056_s12 + $0x60] sm:$0xff]   ;;  %v897_v15 = vld [vmem:[%s1056_s12 + $0x68] sm:$0xff]   ;;  %p905_p13 = pneg %p904_p12  ;;  %p911_p2 = por %p910_p1, %p909_p0 }
  0x1d   : > { %818 = vmatprep.mubr.msk.bf16.mxu1 %vm333_vm1, %v887_v5  ;;  %v898_v16 = vld [vmem:[%s1056_s12 + $0x30] sm:$0xff]   ;;  %v900_v18 = vld [vmem:[%s1056_s12 + $0x38] sm:$0xff]  }
  0x1e   : > { %v899_v17 = vld [vmem:[%s1056_s12 + $0x70] sm:$0xff]   ;;  %v901_v19 = vld [vmem:[%s1056_s12 + $0x78] sm:$0xff]   ;;  %p912_p3 = pnand %p911_p2, %p905_p13 }
  0x1f   : > { %801 = vmatpush3.bf16.msra.mxu0 %v885_v3  ;;  %839 = vmatpush3.bf16.msra.mxu1 %v885_v3 }
  0x22   : > { %803 = vmatmul.mubr.msk.bf16.vlgmr.msra.gmra.mxu0 %vm333_vm1, %v888_v6  ;;  %819 = vmatmul.mubr.msk.bf16.vlgmr.msra.gmra.mxu1 %vm333_vm1, %v889_v7 }
  0x23   : > { %806 = vmatprep.mubr.msk.bf16.mxu0 %vm333_vm1, %v890_v8  ;;  %822 = vmatprep.mubr.msk.bf16.mxu1 %vm333_vm1, %v891_v9 }
  0x2a   : > { %807 = vmatmul.mubr.msk.bf16.gmra.mxu0 %vm333_vm1, %v892_v10  ;;  %823 = vmatmul.mubr.msk.bf16.gmra.mxu1 %vm333_vm1, %v893_v11 }
  0x2b   : > { %810 = vmatprep.mubr.msk.bf16.mxu0 %vm333_vm1, %v894_v12  ;;  %826 = vmatprep.mubr.msk.bf16.mxu1 %vm333_vm1, %v895_v13 }
  0x32   : > { %811 = vmatmul.mubr.msk.bf16.gmra.mxu0 %vm333_vm1, %v896_v14  ;;  %827 = vmatmul.mubr.msk.bf16.gmra.mxu1 %vm333_vm1, %v897_v15 }
  0x33   : > { %814 = vmatprep.mubr.msk.bf16.mxu0 %vm333_vm1, %v898_v16  ;;  %830 = vmatprep.mubr.msk.bf16.mxu1 %vm333_vm1, %v899_v17 }
  0x3a   : > { %815 = vmatmul.mubr.msk.bf16.gmra.mxu0 %vm333_vm1, %v900_v18  ;;  %831 = vmatmul.mubr.msk.bf16.gmra.mxu1 %vm333_vm1, %v901_v19 }
  0xe2   : > { %v804_v21 = vpop.f32.mrf.mxu0  ;;  %v820_v23 = vpop.f32.mrf.mxu1 }
  0xe3   : > { %v551_v24 = vmul.f32 %v804_v21, %v1091_v20  ;;  %v567_v25 = vmul.f32 %v820_v23, %v1091_v20 }
  0xe4   : > { %v420_v26 = vpop.f32.mrf.mxu0  ;;  %v484_v27 = vpop.f32.mrf.mxu1 }
  0xe5   : > { %v590_v28 = vadd.f32 %v1098_v22, %v551_v24  ;;  %v606_v29 = vadd.f32 %v1098_v22, %v567_v25  ;;  %v549_v30 = vmul.f32 %v1091_v20, %v420_v26  ;;  %v565_v31 = vmul.f32 %v1091_v20, %v484_v27 }
  0xe6   : > { %v805_v32 = vpop.f32.mrf.mxu0  ;;  %v821_v33 = vpop.f32.mrf.mxu1 }
  0xe7   : > { %622 = vst [vmem:[%s1106_s23 + $0x10] sm:$0xff] %v590_v28  ;;  %638 = vst [vmem:[%s1106_s23 + $0x90] sm:$0xff] %v606_v29  ;;  %v588_v34 = vadd.f32 %v1098_v22, %v549_v30  ;;  %v604_v35 = vadd.f32 %v1098_v22, %v565_v31  ;;  %v552_v36 = vmul.f32 %v805_v32, %v1091_v20 }
  0xe8   : > { %v568_v37 = vmul.f32 %v821_v33, %v1091_v20  ;;  %v423_v38 = vpop.f32.mrf.mxu0  ;;  %v487_v39 = vpop.f32.mrf.mxu1 }
  0xe9   : > { %620 = vst [vmem:[%s1106_s23] sm:$0xff] %v588_v34  ;;  %636 = vst [vmem:[%s1106_s23 + $0x80] sm:$0xff] %v604_v35  ;;  %v591_v40 = vadd.f32 %v1098_v22, %v552_v36  ;;  %v550_v42 = vmul.f32 %v1091_v20, %v423_v38  ;;  %v566_v43 = vmul.f32 %v1091_v20, %v487_v39 }
  0xea   : > { %v607_v41 = vadd.f32 %v1098_v22, %v568_v37  ;;  %v808_v44 = vpop.f32.mrf.mxu0  ;;  %v824_v45 = vpop.f32.mrf.mxu1 }
  0xeb   : > { %623 = vst [vmem:[%s1106_s23 + $0x18] sm:$0xff] %v591_v40  ;;  %v589_v46 = vadd.f32 %v1098_v22, %v550_v42  ;;  %v605_v47 = vadd.f32 %v1098_v22, %v566_v43  ;;  %v555_v48 = vmul.f32 %v808_v44, %v1091_v20  ;;  %v571_v49 = vmul.f32 %v824_v45, %v1091_v20 }
  0xec   : > { %639 = vst [vmem:[%s1106_s23 + $0x98] sm:$0xff] %v607_v41  ;;  %v436_v50 = vpop.f32.mrf.mxu0  ;;  %v500_v51 = vpop.f32.mrf.mxu1 }
  0xed   : > { %621 = vst [vmem:[%s1106_s23 + $0x8] sm:$0xff] %v589_v46  ;;  %637 = vst [vmem:[%s1106_s23 + $0x88] sm:$0xff] %v605_v47  ;;  %v594_v52 = vadd.f32 %v1098_v22, %v555_v48  ;;  %v610_v53 = vadd.f32 %v1098_v22, %v571_v49  ;;  %v553_v54 = vmul.f32 %v1091_v20, %v436_v50 }
  0xee   : > { %v569_v55 = vmul.f32 %v1091_v20, %v500_v51  ;;  %v809_v56 = vpop.f32.mrf.mxu0  ;;  %v825_v57 = vpop.f32.mrf.mxu1 }
  0xef   : > { %626 = vst [vmem:[%s1106_s23 + $0x30] sm:$0xff] %v594_v52  ;;  %642 = vst [vmem:[%s1106_s23 + $0xb0] sm:$0xff] %v610_v53  ;;  %v592_v58 = vadd.f32 %v1098_v22, %v553_v54  ;;  %v556_v60 = vmul.f32 %v809_v56, %v1091_v20  ;;  %v572_v61 = vmul.f32 %v825_v57, %v1091_v20 }
  0xf0   : > { %v608_v59 = vadd.f32 %v1098_v22, %v569_v55  ;;  %v439_v62 = vpop.f32.mrf.mxu0  ;;  %v503_v63 = vpop.f32.mrf.mxu1 }
  0xf1   : > { %624 = vst [vmem:[%s1106_s23 + $0x20] sm:$0xff] %v592_v58  ;;  %v595_v0 = vadd.f32 %v1098_v22, %v556_v60  ;;  %v611_v1 = vadd.f32 %v1098_v22, %v572_v61  ;;  %v554_v2 = vmul.f32 %v1091_v20, %v439_v62  ;;  %v570_v3 = vmul.f32 %v1091_v20, %v503_v63 }
  0xf2   : > { %640 = vst [vmem:[%s1106_s23 + $0xa0] sm:$0xff] %v608_v59  ;;  %v812_v4 = vpop.f32.mrf.mxu0  ;;  %v828_v5 = vpop.f32.mrf.mxu1 }
  0xf3   : > { %627 = vst [vmem:[%s1106_s23 + $0x38] sm:$0xff] %v595_v0  ;;  %643 = vst [vmem:[%s1106_s23 + $0xb8] sm:$0xff] %v611_v1  ;;  %v593_v6 = vadd.f32 %v1098_v22, %v554_v2  ;;  %v609_v7 = vadd.f32 %v1098_v22, %v570_v3  ;;  %v559_v8 = vmul.f32 %v812_v4, %v1091_v20 }
  0xf4   : > { %v575_v9 = vmul.f32 %v828_v5, %v1091_v20  ;;  %v452_v10 = vpop.f32.mrf.mxu0  ;;  %v516_v11 = vpop.f32.mrf.mxu1 }
  0xf5   : > { %625 = vst [vmem:[%s1106_s23 + $0x28] sm:$0xff] %v593_v6  ;;  %641 = vst [vmem:[%s1106_s23 + $0xa8] sm:$0xff] %v609_v7  ;;  %v598_v12 = vadd.f32 %v1098_v22, %v559_v8  ;;  %v557_v14 = vmul.f32 %v1091_v20, %v452_v10  ;;  %v573_v15 = vmul.f32 %v1091_v20, %v516_v11 }
  0xf6   : > { %v614_v13 = vadd.f32 %v1098_v22, %v575_v9  ;;  %v813_v16 = vpop.f32.mrf.mxu0  ;;  %v829_v17 = vpop.f32.mrf.mxu1 }
  0xf7   : > { %630 = vst [vmem:[%s1106_s23 + $0x50] sm:$0xff] %v598_v12  ;;  %v596_v18 = vadd.f32 %v1098_v22, %v557_v14  ;;  %v612_v19 = vadd.f32 %v1098_v22, %v573_v15  ;;  %v560_v21 = vmul.f32 %v813_v16, %v1091_v20  ;;  %v576_v23 = vmul.f32 %v829_v17, %v1091_v20 }
  0xf8   : > { %646 = vst [vmem:[%s1106_s23 + $0xd0] sm:$0xff] %v614_v13  ;;  %v455_v24 = vpop.f32.mrf.mxu0  ;;  %v519_v25 = vpop.f32.mrf.mxu1 }
  0xf9   : > { %628 = vst [vmem:[%s1106_s23 + $0x40] sm:$0xff] %v596_v18  ;;  %644 = vst [vmem:[%s1106_s23 + $0xc0] sm:$0xff] %v612_v19  ;;  %v599_v26 = vadd.f32 %v1098_v22, %v560_v21  ;;  %v615_v27 = vadd.f32 %v1098_v22, %v576_v23  ;;  %v558_v28 = vmul.f32 %v1091_v20, %v455_v24 }
  0xfa   : > { %v574_v29 = vmul.f32 %v1091_v20, %v519_v25  ;;  %v816_v30 = vpop.f32.mrf.mxu0  ;;  %v832_v31 = vpop.f32.mrf.mxu1 }
  0xfb   : > { %631 = vst [vmem:[%s1106_s23 + $0x58] sm:$0xff] %v599_v26  ;;  %647 = vst [vmem:[%s1106_s23 + $0xd8] sm:$0xff] %v615_v27  ;;  %v597_v32 = vadd.f32 %v1098_v22, %v558_v28  ;;  %v563_v34 = vmul.f32 %v816_v30, %v1091_v20  ;;  %v579_v35 = vmul.f32 %v832_v31, %v1091_v20 }
  0xfc   : > { %v613_v33 = vadd.f32 %v1098_v22, %v574_v29  ;;  %v468_v36 = vpop.f32.mrf.mxu0  ;;  %v532_v37 = vpop.f32.mrf.mxu1 }
  0xfd   : > { %629 = vst [vmem:[%s1106_s23 + $0x48] sm:$0xff] %v597_v32  ;;  %v602_v38 = vadd.f32 %v1098_v22, %v563_v34  ;;  %v618_v39 = vadd.f32 %v1098_v22, %v579_v35  ;;  %v561_v40 = vmul.f32 %v1091_v20, %v468_v36  ;;  %v577_v41 = vmul.f32 %v1091_v20, %v532_v37 }
  0xfe   : > { %645 = vst [vmem:[%s1106_s23 + $0xc8] sm:$0xff] %v613_v33  ;;  %v817_v42 = vpop.f32.mrf.mxu0  ;;  %v833_v43 = vpop.f32.mrf.mxu1 }
  0xff   : > { %634 = vst [vmem:[%s1106_s23 + $0x70] sm:$0xff] %v602_v38  ;;  %650 = vst [vmem:[%s1106_s23 + $0xf0] sm:$0xff] %v618_v39  ;;  %v600_v44 = vadd.f32 %v1098_v22, %v561_v40  ;;  %v616_v45 = vadd.f32 %v1098_v22, %v577_v41  ;;  %v564_v46 = vmul.f32 %v817_v42, %v1091_v20 }
 0x100   : > { %v580_v47 = vmul.f32 %v833_v43, %v1091_v20  ;;  %v471_v48 = vpop.f32.mrf.mxu0  ;;  %v535_v49 = vpop.f32.mrf.mxu1 }
 0x101   : > { %632 = vst [vmem:[%s1106_s23 + $0x60] sm:$0xff] %v600_v44  ;;  %648 = vst [vmem:[%s1106_s23 + $0xe0] sm:$0xff] %v616_v45  ;;  %v603_v50 = vadd.f32 %v1098_v22, %v564_v46  ;;  %v562_v52 = vmul.f32 %v1091_v20, %v471_v48  ;;  %v578_v53 = vmul.f32 %v1091_v20, %v535_v49 }
 0x102   : > { %v619_v51 = vadd.f32 %v1098_v22, %v580_v47 }
 0x103   : > { %635 = vst [vmem:[%s1106_s23 + $0x78] sm:$0xff] %v603_v50  ;;  %v601_v54 = vadd.f32 %v1098_v22, %v562_v52  ;;  %v617_v55 = vadd.f32 %v1098_v22, %v578_v53 }
 0x104   : > { %651 = vst [vmem:[%s1106_s23 + $0xf8] sm:$0xff] %v619_v51 }
 0x105   : > { %633 = vst [vmem:[%s1106_s23 + $0x68] sm:$0xff] %v601_v54  ;;  %649 = vst [vmem:[%s1106_s23 + $0xe8] sm:$0xff] %v617_v55 }
 0x106   : > { %915 = shalt.err (!%p912_p3)
}
 0x107   : > { %s916_s10 = scalar_lea.hbm %s1197_s0, 4096  ;;  %s920_s13 = scalar_lea.hbm %s1253_s4, 8192 }
 0x108   : > { %p917_p4 = scmp.ne.s32.totalorder %s1197_s0, %s916_s10  ;;  %p921_p9 = scmp.lt.s32.totalorder %s1197_s0, %s1253_s4 }
 0x109   : > { %p922_p10 = scmp.lt.s32.totalorder %s920_s13, %s916_s10 }
 0x10a   : > { %p918_p7 = pnand %p917_p4, %p1033_p5 }
 0x10b   : > { %p923_p11 = por %p922_p10, %p921_p9 }
 0x10c   : > { %p919_p8 = pneg %p918_p7 }
 0x10e   : > { %p924_p12 = pnand %p923_p11, %p919_p8 }
 0x110   : > { %927 = shalt.err (!%p924_p12)
}
 0x111   : > { %s965_s16 = smov 128   ;;  %s966_s21 = smov 8  }
 0x112   : > { %842 = dma.vmem_to_hbm [thread:$0]  (%p1033_p5), %s1199_s28, 4096, %s1197_s0, %s1209_s5, %s965_s16, %s965_s16, %s966_s21  }
 0x113 PF: > { %p848_p13 = scmp.ge.s32.totalorder %s962_s20, 2  ;;  %s681_s23 = sand.u32 1, %s950_s17  }
 0x114   : > { %s682_s24 = scalar_lea.sflag [#allocation4], %s681_s23 }
 0x115   : > { %p845_p0 = pnand %p848_p13, %p1037_p6 }
 0x117   : > { %p846_p1 = pneg %p845_p0 }
 0x119   : > { %945 = dma.done.wait (%p846_p1), %s682_s24, 4096  }
 0x11a   : > { %947 = vsyncadd (%p846_p1), %s682_s24, 4294963200  ;;  %p15_p2 = scmp.ge.s32.totalorder %s1020_s22, 4   ;;  %s1256_s17 = smov %s954_s18 }
 0x11b   : > { %s1257_s18 = smov %s958_s19  ;;  %s1258_s19 = smov %s1031_s25 }
 0x11c   : > { %s1259_s20 = smov %s1020_s22  ;;  %17 = sbr.rel (!%p15_p2) target bundleno = 5 (0x5), region = 71 }
 0x121   :  { %687 = vsyncpa [#allocation4], 1 }
 0x122   :  { %689 = vsyncpa [#allocation4 + $0x1], 1 }

</bundles_post_ra>
